<compile_context>
chip_gen: v7x
topology: tpu7x:2x2x1
jax: 0.10.0
libtpu: 0.0.40
codegen_flags: <defaults>
</compile_context>

<pallas_src>
import math
import functools

import numpy as np
import jax
import jax.numpy as jnp
from jax.experimental import pallas as pl
from jax.experimental.pallas import tpu as pltpu

LANE = 128   # TPU vreg lane width; last block dim is always a multiple of this.

_BLOCK_TARGET_BYTES = {'v5e': 3 << 20, 'v6e': 8 << 20, 'v7x': 8 << 20}
_VMEM_CAP_BYTES = {'v5e': 96 << 20, 'v6e': 96 << 20, 'v7x': 48 << 20}


# ----------------------------- helpers (glue) -------------------------------
def to_list(x, length):
    if isinstance(x, (list, tuple)):
        assert len(x) == length
        return list(x)
    return [x] * length


def to_pair(x):
    return tuple(to_list(x, 2))


def _cdiv(a, b):
    return -(-a // b)


def _round_up(a, m):
    return _cdiv(a, m) * m


def _pad_like_torch(x, pad_sides, pad_sizes):
    """Replicates Pad(side=...)(x, size=...) with mode='constant' (zeros)."""
    cfg = [(0, 0), (0, 0)]
    for side, size in zip(pad_sides, pad_sizes):
        size = int(size)
        if side is None or size < 1:
            cfg.append((0, 0))
        elif side == 'front':
            cfg.append((size, 0))
        elif side == 'both':
            cfg.append((size // 2, math.ceil(size / 2)))
        elif side == 'end':
            cfg.append((0, size))
        else:
            raise ValueError(f'pad side {side} unknown')
    return jnp.pad(x, cfg, mode='constant')


def _trim_both(x, sizes):
    """Replicates Trim(side='both')(x, size=sizes)."""
    slc = [slice(None)] * x.ndim
    for i, size in enumerate(sizes):
        size = int(size)
        if size < 1:
            continue
        slc[2 + i] = slice(size // 2, x.shape[2 + i] - math.ceil(size / 2))
    return x[tuple(slc)]


def _tpu_generation():
    try:
        kind = jax.devices()[0].device_kind.lower()
    except Exception:
        return 'unknown'
    if 'v5 lite' in kind or 'v5e' in kind or 'v5litepod' in kind:
        return 'v5e'
    if 'v6' in kind or 'trillium' in kind:
        return 'v6e'
    if '7x' in kind or 'v7' in kind:
        return 'v7x'
    return 'unknown'


def _choose_rows(M, P, itemsize, gen, block_bytes=None):
    """Rows (of 128 lanes) per grid step.

    Big enough to amortize the ~0.35us per-step overhead (per-generation byte
    target), rounded to the dtype sublane multiple, capped so v7x still gets
    >= 2 parallel programs for its two TensorCores."""
    itemsize = int(itemsize)
    sub = max(8, 32 // max(itemsize, 1))          # 8 f32 / 16 bf16 / 32 int8
    target = block_bytes if block_bytes is not None \
        else _BLOCK_TARGET_BYTES.get(gen, 4 << 20)
    per_row = P * LANE * itemsize                 # input bytes per M-row
    tm = max(sub, (int(target) // per_row) // sub * sub)
    if gen == 'v7x' and M > sub:
        # guarantee >= 2 grid programs so both TensorCores get work
        tm = min(tm, max(sub, _round_up(_cdiv(M, 2), sub)))
    if tm >= M:
        return int(M)                             # single full block: always legal
    return int(tm)


def _vmem_limit(gen, need_bytes):
    cap = _VMEM_CAP_BYTES.get(gen, 48 << 20)
    return int(min(cap, max(32 << 20, int(1.5 * need_bytes) + (2 << 20))))


# ------------------------------ Pallas kernels -------------------------------
def _max_pool_idx_kernel(x_ref, base_ref, out_ref, idx_ref, *, offs):
    # x_ref: (P, TM, 128) window-stacked values; base/out/idx: (TM, 128).
    best = x_ref[0]
    best_off = jnp.zeros(best.shape, jnp.int32)
    for k in range(1, x_ref.shape[0]):        # P = ph*pw, tiny -> unrolled VPU code
        v = x_ref[k]
        take = v > best                       # strict '>' keeps first max (torch tie rule)
        best = jnp.where(take, v, best)
        best_off = jnp.where(take, jnp.int32(offs[k]), best_off)
    out_ref[...] = best
    # base = (oh*ph)*Wp + ow*pw, precomputed on the host (no in-kernel div/mod).
    idx_ref[...] = base_ref[...] + best_off


def _max_pool_kernel(x_ref, out_ref):
    best = x_ref[0]
    for k in range(1, x_ref.shape[0]):
        best = jnp.maximum(best, x_ref[k])
    out_ref[...] = best


def _avg_pool_kernel(x_ref, out_ref):
    P = x_ref.shape[0]
    s = x_ref[0].astype(jnp.float32)
    for k in range(1, P):
        s = s + x_ref[k].astype(jnp.float32)
    out_ref[...] = (s * jnp.float32(1.0 / P)).astype(out_ref.dtype)


# ------------------------------ Pool2d wrapper --------------------------------
def pool2d(x, *, pool_type, pool_size, pad_side='both', seq_len=None,
           return_indices=True, block_bytes=None):
    """JAX/Pallas equivalent of padertorch Pool2d.forward.  x: (N, C, H, W)."""
    ph, pw = to_pair(pool_size)
    pad_sides = to_pair(pad_side)

    if ph < 2 and pw < 2:
        return x, seq_len, None

    N, C, H, W = x.shape
    pad_size = np.array([ph - 1 - (H - 1) % ph, pw - 1 - (W - 1) % pw])
    pad_size = np.where([p is None for p in pad_sides], 0, pad_size)
    if np.any(pad_size > 0):
        x = _pad_like_torch(x, pad_sides, pad_size)
    x = _trim_both(x, np.array(x.shape[2:]) % np.array([ph, pw]))

    Hp, Wp = int(x.shape[2]), int(x.shape[3])
    Ho, Wo = Hp // ph, Wp // pw
    P = ph * pw
    L = Ho * Wo
    NC = N * C
    NCL = NC * L                     # all output pixels, flattened
    M = _cdiv(NCL, LANE)             # rows of 128 lanes
    NCLp = M * LANE

    # Window extraction -> (P, M, 128): window positions k = di*pw+dj on axis 0,
    # all flattened output pixels (n, c, oh, ow) padded to a lane-dense slab.
    # TODO(synk): this is one XLA HBM transpose pass over the input; removing it
    # needs allow_input_fusion or a manual strided DMA (see header comment).
    xs = (
        x.reshape(NC, Ho, ph, Wo, pw)
        .transpose(2, 4, 0, 1, 3)
        .reshape(P, NCL)
    )
    if NCLp != NCL:
        xs = jnp.pad(xs, ((0, 0), (0, NCLp - NCL)))
    xs = xs.reshape(P, M, LANE)

    itemsize = jnp.dtype(x.dtype).itemsize
    gen = _tpu_generation()
    TM = _choose_rows(M, P, itemsize, gen, block_bytes)
    grid = (pl.cdiv(M, TM),)         # ragged last block handled by Pallas masking

    in_block = pl.BlockSpec((P, TM, LANE), lambda i: (0, i, 0))
    out_block = pl.BlockSpec((TM, LANE), lambda i: (i, 0))

    in_blk_bytes = P * TM * LANE * itemsize
    out_blk_bytes = TM * LANE * itemsize
    i32_blk_bytes = TM * LANE * 4

    def _finish(flat):
        return flat.reshape(NCLp)[:NCL].reshape(N, C, Ho, Wo)

    if pool_type == 'max':
        if return_indices:
            # Host-precomputed flat-index base map (same blocking as the output).
            fl = np.arange(L, dtype=np.int64)
            base_l = ((fl // Wo) * (ph * Wp) + (fl % Wo) * pw).astype(np.int32)
            base_np = np.zeros((NCLp,), np.int32)
            base_np[:NCL] = np.tile(base_l, NC)
            base = jnp.asarray(base_np.reshape(M, LANE))
            offs = tuple(int((k // pw) * Wp + (k % pw)) for k in range(P))

            need = 2 * (in_blk_bytes + out_blk_bytes + 2 * i32_blk_bytes)
            cparams = pltpu.CompilerParams(
                dimension_semantics=("parallel",),
                vmem_limit_bytes=_vmem_limit(gen, need))
            cost = pl.CostEstimate(
                flops=int(3 * P * NCLp), transcendentals=0,
                bytes_accessed=int(P * NCLp * itemsize + NCLp * itemsize
                                   + 2 * NCLp * 4))

            kern = functools.partial(_max_pool_idx_kernel, offs=offs)
            out, idx = pl.pallas_call(
                kern,
                out_shape=(
                    jax.ShapeDtypeStruct((M, LANE), x.dtype),
                    # TODO(synk): torch returns int64 indices; int32 is used
                    # here (x64 is disabled by default and Hp*Wp << 2**31).
                    jax.ShapeDtypeStruct((M, LANE), jnp.int32),
                ),
                grid=grid,
                in_specs=[in_block,
                          pl.BlockSpec((TM, LANE), lambda i: (i, 0))],
                out_specs=(out_block,
                           pl.BlockSpec((TM, LANE), lambda i: (i, 0))),
                compiler_params=cparams,
                cost_estimate=cost,
            )(xs, base)
            pooled = _finish(out)
            pool_indices = _finish(idx)
        else:
            need = 2 * (in_blk_bytes + out_blk_bytes)
            cparams = pltpu.CompilerParams(
                dimension_semantics=("parallel",),
                vmem_limit_bytes=_vmem_limit(gen, need))
            cost = pl.CostEstimate(
                flops=int(P * NCLp), transcendentals=0,
                bytes_accessed=int(P * NCLp * itemsize + NCLp * itemsize))
            out = pl.pallas_call(
                _max_pool_kernel,
                out_shape=jax.ShapeDtypeStruct((M, LANE), x.dtype),
                grid=grid,
                in_specs=[in_block],
                out_specs=out_block,
                compiler_params=cparams,
                cost_estimate=cost,
            )(xs)
            pooled = _finish(out)
            pool_indices = None
    elif pool_type == 'avg':
        need = 2 * (in_blk_bytes + out_blk_bytes)
        cparams = pltpu.CompilerParams(
            dimension_semantics=("parallel",),
            vmem_limit_bytes=_vmem_limit(gen, need))
        cost = pl.CostEstimate(
            flops=int((P + 1) * NCLp), transcendentals=0,
            bytes_accessed=int(P * NCLp * itemsize + NCLp * itemsize))
        out = pl.pallas_call(
            _avg_pool_kernel,
            out_shape=jax.ShapeDtypeStruct((M, LANE), x.dtype),
            grid=grid,
            in_specs=[in_block],
            out_specs=out_block,
            compiler_params=cparams,
            cost_estimate=cost,
        )(xs)
        pooled = _finish(out)
        pool_indices = None
    else:
        raise ValueError(f'{pool_type} pooling unknown.')

    if seq_len is not None:
        seq_len = np.asarray(seq_len) / pw
        if pad_sides[-1] is None:
            seq_len = np.floor(seq_len).astype(int)
        else:
            seq_len = np.ceil(seq_len).astype(int)

    return pooled, seq_len, pool_indices


# ------------------------- numpy reference (for tests) ------------------------
def _np_pool2d_ref(xn, pool_type, pool_size, pad_side='both'):
    ph, pw = to_pair(pool_size)
    sides = to_pair(pad_side)
    N, C, H, W = xn.shape
    pad_size = np.array([ph - 1 - (H - 1) % ph, pw - 1 - (W - 1) % pw])
    pad_size = np.where([s is None for s in sides], 0, pad_size)
    cfg = [(0, 0), (0, 0)]
    for side, size in zip(sides, pad_size):
        size = int(size)
        if side is None or size < 1:
            cfg.append((0, 0))
        elif side == 'front':
            cfg.append((size, 0))
        elif side == 'both':
            cfg.append((size // 2, math.ceil(size / 2)))
        elif side == 'end':
            cfg.append((0, size))
    xp = np.pad(xn, cfg)
    th, tw = xp.shape[2] % ph, xp.shape[3] % pw
    xp = xp[:, :, th // 2: xp.shape[2] - (th - th // 2),
            tw // 2: xp.shape[3] - (tw - tw // 2)]
    Hp, Wp = xp.shape[2], xp.shape[3]
    Ho, Wo = Hp // ph, Wp // pw
    win = (xp.reshape(N, C, Ho, ph, Wo, pw)
             .transpose(0, 1, 2, 4, 3, 5)
             .reshape(N, C, Ho, Wo, ph * pw))
    if pool_type == 'max':
        out = win.max(-1)
        k = win.argmax(-1)
        oh = np.arange(Ho)[None, None, :, None]
        ow = np.arange(Wo)[None, None, None, :]
        idx = (oh * ph + k // pw) * Wp + (ow * pw + k % pw)
        return out, idx
    return win.mean(-1), None


# ----------------------------------- main -------------------------------------
if __name__ == "__main__":
    key = jax.random.PRNGKey(0)

    # Case 1: even shapes (no pad/trim), 2x2 max + avg pooling.
    N, C, H, W = 2, 4, 16, 16
    x = jax.random.normal(key, (N, C, H, W), dtype=jnp.float32)
    seq_len = np.array([16, 12])

    y_max, sl_max, idx = pool2d(
        x, pool_type='max', pool_size=2, pad_side='both', seq_len=seq_len)
    y_avg, sl_avg, _ = pool2d(
        x, pool_type='avg', pool_size=2, pad_side='both', seq_len=seq_len)
    y_ni, _, none_idx = pool2d(
        x, pool_type='max', pool_size=2, pad_side='both', return_indices=False)
    jax.block_until_ready((y_max, idx, y_avg, y_ni))

    xn = np.asarray(x, np.float32)
    ref_max, ref_idx = _np_pool2d_ref(xn, 'max', 2)
    ref_avg, _ = _np_pool2d_ref(xn, 'avg', 2)

    assert np.allclose(np.asarray(y_max), ref_max, atol=1e-6)
    assert np.allclose(np.asarray(y_ni), ref_max, atol=1e-6)
    assert none_idx is None
    assert np.allclose(np.asarray(y_avg), ref_avg, atol=1e-5)
    assert np.array_equal(np.asarray(idx), ref_idx)
    assert np.array_equal(sl_max, np.ceil(seq_len / 2).astype(int))
    assert np.array_equal(sl_avg, np.ceil(seq_len / 2).astype(int))

    # Case 2: odd shapes exercising the pad path, rectangular pool (3, 2),
    # flattened output count (210) not a multiple of 128 -> lane-pad path.
    x2 = jax.random.normal(jax.random.PRNGKey(1), (2, 3, 15, 13), dtype=jnp.float32)
    y2, _, idx2 = pool2d(x2, pool_type='max', pool_size=(3, 2), pad_side='both')
    jax.block_until_ready((y2, idx2))
    ref2, ref_idx2 = _np_pool2d_ref(np.asarray(x2, np.float32), 'max', (3, 2))
    assert np.allclose(np.asarray(y2), ref2, atol=1e-6)
    assert np.array_equal(np.asarray(idx2), ref_idx2)

    # Case 3: force a small block so the grid has several programs and a ragged
    # last block (general tiled path), rectangular pool (2, 3).
    x3 = jax.random.normal(jax.random.PRNGKey(2), (2, 8, 30, 36), dtype=jnp.float32)
    y3, _, idx3 = pool2d(x3, pool_type='max', pool_size=(2, 3), pad_side='both',
                         block_bytes=16 * 1024)
    y3a, _, _ = pool2d(x3, pool_type='avg', pool_size=(2, 3), pad_side='both',
                       block_bytes=16 * 1024)
    jax.block_until_ready((y3, idx3, y3a))
    ref3, ref_idx3 = _np_pool2d_ref(np.asarray(x3, np.float32), 'max', (2, 3))
    ref3a, _ = _np_pool2d_ref(np.asarray(x3, np.float32), 'avg', (2, 3))
    assert np.allclose(np.asarray(y3), ref3, atol=1e-6)
    assert np.array_equal(np.asarray(idx3), ref_idx3)
    assert np.allclose(np.asarray(y3a), ref3a, atol=1e-5)

    print("KERNEL_OK")
</pallas_src>

<mosaic_0001>
module attributes {stable_mosaic.version = 11 : i64} {
  func.func @_max_pool_idx_kernel(%arg0: i32, %arg1: memref<4x4x128xf32, #tpu.memory_space<vmem>>, %arg2: memref<4x128xi32, #tpu.memory_space<vmem>>, %arg3: memref<4x128xf32, #tpu.memory_space<vmem>>, %arg4: memref<4x128xi32, #tpu.memory_space<vmem>>) attributes {dimension_semantics = [#tpu.dimension_semantics<parallel>], iteration_bounds = array<i64: 1>, scalar_prefetch = 0 : i64, scratch_operands = 0 : i64, tpu.core_type = #tpu.core_type<tc>, window_params = [{transform_indices = @transform_0, window_bounds = array<i64: 4, 4, 128>}, {transform_indices = @transform_1, window_bounds = array<i64: 4, 128>}, {transform_indices = @transform_2, window_bounds = array<i64: 4, 128>}, {transform_indices = @transform_3, window_bounds = array<i64: 4, 128>}]} {
    %c0 = arith.constant 0 : index
    %c0_0 = arith.constant 0 : index
    %c0_1 = arith.constant 0 : index
    %0 = vector.load %arg1[%c0, %c0_0, %c0_1] : memref<4x4x128xf32, #tpu.memory_space<vmem>>, vector<1x4x128xf32>
    %1 = vector.shape_cast %0 : vector<1x4x128xf32> to vector<4x128xf32>
    %c0_i32 = arith.constant 0 : i32
    %2 = vector.broadcast %c0_i32 : i32 to vector<4x128xi32>
    %c1 = arith.constant 1 : index
    %c0_2 = arith.constant 0 : index
    %c0_3 = arith.constant 0 : index
    %3 = vector.load %arg1[%c1, %c0_2, %c0_3] : memref<4x4x128xf32, #tpu.memory_space<vmem>>, vector<1x4x128xf32>
    %4 = vector.shape_cast %3 : vector<1x4x128xf32> to vector<4x128xf32>
    %5 = arith.cmpf ogt, %4, %1 : vector<4x128xf32>
    %6 = arith.select %5, %4, %1 : vector<4x128xi1>, vector<4x128xf32>
    %c1_i32 = arith.constant 1 : i32
    %7 = vector.broadcast %c1_i32 : i32 to vector<4x128xi32>
    %8 = arith.select %5, %7, %2 : vector<4x128xi1>, vector<4x128xi32>
    %c2 = arith.constant 2 : index
    %c0_4 = arith.constant 0 : index
    %c0_5 = arith.constant 0 : index
    %9 = vector.load %arg1[%c2, %c0_4, %c0_5] : memref<4x4x128xf32, #tpu.memory_space<vmem>>, vector<1x4x128xf32>
    %10 = vector.shape_cast %9 : vector<1x4x128xf32> to vector<4x128xf32>
    %11 = arith.cmpf ogt, %10, %6 : vector<4x128xf32>
    %12 = arith.select %11, %10, %6 : vector<4x128xi1>, vector<4x128xf32>
    %c16_i32 = arith.constant 16 : i32
    %13 = vector.broadcast %c16_i32 : i32 to vector<4x128xi32>
    %14 = arith.select %11, %13, %8 : vector<4x128xi1>, vector<4x128xi32>
    %c3 = arith.constant 3 : index
    %c0_6 = arith.constant 0 : index
    %c0_7 = arith.constant 0 : index
    %15 = vector.load %arg1[%c3, %c0_6, %c0_7] : memref<4x4x128xf32, #tpu.memory_space<vmem>>, vector<1x4x128xf32>
    %16 = vector.shape_cast %15 : vector<1x4x128xf32> to vector<4x128xf32>
    %17 = arith.cmpf ogt, %16, %12 : vector<4x128xf32>
    %18 = arith.select %17, %16, %12 : vector<4x128xi1>, vector<4x128xf32>
    %c17_i32 = arith.constant 17 : i32
    %19 = vector.broadcast %c17_i32 : i32 to vector<4x128xi32>
    %20 = arith.select %17, %19, %14 : vector<4x128xi1>, vector<4x128xi32>
    %c0_8 = arith.constant 0 : index
    %c0_9 = arith.constant 0 : index
    %21 = vector.load %arg3[%c0_8, %c0_9] : memref<4x128xf32, #tpu.memory_space<vmem>>, vector<4x128xf32>
    tpu.vector_store %arg3[%c0_8, %c0_9], %18 {strides = array<i32>} : memref<4x128xf32, #tpu.memory_space<vmem>>, vector<4x128xf32>,
    %c0_10 = arith.constant 0 : index
    %c0_11 = arith.constant 0 : index
    %22 = vector.load %arg2[%c0_10, %c0_11] : memref<4x128xi32, #tpu.memory_space<vmem>>, vector<4x128xi32>
    %23 = arith.addi %22, %20 : vector<4x128xi32>
    %c0_12 = arith.constant 0 : index
    %c0_13 = arith.constant 0 : index
    %24 = vector.load %arg4[%c0_12, %c0_13] : memref<4x128xi32, #tpu.memory_space<vmem>>, vector<4x128xi32>
    tpu.vector_store %arg4[%c0_12, %c0_13], %23 {strides = array<i32>} : memref<4x128xi32, #tpu.memory_space<vmem>>, vector<4x128xi32>,
    return
  }
  func.func @transform_0(%arg0: i32) -> (i32, i32, i32) {
    %c0_i32 = arith.constant 0 : i32
    %c0_i32_0 = arith.constant 0 : i32
    %c0_i32_1 = arith.constant 0 : i32
    return %c0_i32, %arg0, %c0_i32_0 : i32, i32, i32
  }
  func.func @transform_1(%arg0: i32) -> (i32, i32) {
    %c0_i32 = arith.constant 0 : i32
    %c0_i32_0 = arith.constant 0 : i32
    return %arg0, %c0_i32 : i32, i32
  }
  func.func @transform_2(%arg0: i32) -> (i32, i32) {
    %c0_i32 = arith.constant 0 : i32
    %c0_i32_0 = arith.constant 0 : i32
    return %arg0, %c0_i32 : i32, i32
  }
  func.func @transform_3(%arg0: i32) -> (i32, i32) {
    %c0_i32 = arith.constant 0 : i32
    %c0_i32_0 = arith.constant 0 : i32
    return %arg0, %c0_i32 : i32, i32
  }
}

</mosaic_0001>

<bundles_post_ra>
// kernel: tpu_custom_call.1
= control target key start
LH: loop header
LB: loop body
LE: loop exit
PB: predicated region body
PF: predicated region fallthrough
CT: control target
= control target key end

     0   :  { %9 = vsyncpa [#allocation3], 0  ;;  %s269_s0 = inlined_call_operand.hbm [shape: f32[4,4,128], index: 0, kind: input, shape index: {}]   ;;  %s270_s1 = inlined_call_operand.hbm [shape: s32[4,128], index: 1, kind: input, shape index: {}]   ;;  %s271_s2 = inlined_call_operand.hbm [shape: f32[4,128], index: 2, kind: output, shape index: {0}]   ;;  %s272_s3 = inlined_call_operand.hbm [shape: s32[4,128], index: 3, kind: output, shape index: {1}]  }
   0x1   :  { %10 = vsyncpa [#allocation6], 0 }
   0x2   :  { %11 = vsyncpa [#allocation4], 0 }
   0x3   :  { %12 = vsyncpa [#allocation9], 0  ;;  %s194_s12 = smov [#allocation2]   ;;  %s98_s16 = scalar_lea.hbm %s269_s0, 256 }
   0x4   :  { %s18_s13 = sshll.u32 %s194_s12, 4  ;;  %p99_p0 = scmp.ne.s32.totalorder %s269_s0, %s98_s16  ;;  %s19_s13 = int_to_ptr.vmem [resolvable:$true] %s18_s13 }
   0x5   :  { %p102_p1 = scmp.lt.u32.totalorder %s98_s16, %s269_s0 }
   0x7   :  { %p104_p2 = pnand %p102_p1, %p99_p0 }
   0x9   :  { %107 = shalt.err (!%p104_p2)
}
   0xa   :  { %s108_s21 = scalar_lea.vmem %s19_s13, 256  ;;  %p113_p4 = scmp.lt.s32.totalorder %s19_s13, %s19_s13 }
   0xb   :  { %p109_p3 = scmp.ne.s32.totalorder %s19_s13, %s108_s21  ;;  %p114_p5 = scmp.lt.s32.totalorder %s108_s21, %s108_s21 }
   0xd   :  { %p115_p6 = por %p114_p5, %p113_p4 }
   0xf   :  { %p116_p7 = pnand %p115_p6, %p109_p3 }
  0x11   :  { %119 = shalt.err (!%p116_p7)
}
  0x12   :  { %s195_s22 = smov 64   ;;  %s196_s23 = smov 4  }
  0x13   :  { %24 = dma.hbm_to_vmem [thread:$0]  %s269_s0, 256, %s19_s13, [#allocation3], %s195_s22, %s195_s22, %s196_s23  }
  0x14   :  { %s197_s26 = smov [#allocation5]   ;;  %s120_s30 = scalar_lea.hbm %s270_s1, 64 }
  0x15   :  { %s31_s27 = sshll.u32 %s197_s26, 4  ;;  %p121_p8 = scmp.ne.s32.totalorder %s270_s1, %s120_s30  ;;  %s32_s27 = int_to_ptr.vmem [resolvable:$true] %s31_s27 }
  0x16   :  { %p124_p9 = scmp.lt.u32.totalorder %s120_s30, %s270_s1 }
  0x18   :  { %p126_p10 = pnand %p124_p9, %p121_p8 }
  0x1a   :  { %129 = shalt.err (!%p126_p10)
}
  0x1b   :  { %s130_s8 = scalar_lea.vmem %s32_s27, 64  ;;  %p135_p12 = scmp.lt.s32.totalorder %s32_s27, %s32_s27 }
  0x1c   :  { %p131_p11 = scmp.ne.s32.totalorder %s32_s27, %s130_s8  ;;  %p136_p13 = scmp.lt.s32.totalorder %s130_s8, %s130_s8 }
  0x1e   :  { %p137_p0 = por %p136_p13, %p135_p12 }
  0x20   :  { %p138_p1 = pnand %p137_p0, %p131_p11 }
  0x22   :  { %141 = shalt.err (!%p138_p1)
}
  0x23   :  { %34 = dma.hbm_to_vmem [thread:$0]  %s270_s1, 64, %s32_s27, [#allocation6]  }
  0x24   :  { %186 = dma.done.wait [#allocation3], 256  }
  0x25   :  { %187 = vsyncadd [#allocation3], 4294967040 }
  0x26   :  { %188 = dma.done.wait [#allocation6], 64  }
  0x27   :  { %189 = vsyncadd [#allocation6], 4294967232  ;;  %v41_v0 = vld [vmem:[#allocation2] sm:$0xf]  ;;  %v43_v1 = vld [vmem:[#allocation2 + $0x4] sm:$0xf] }
  0x28   :  { %v48_v2 = vld [vmem:[#allocation2 + $0x8] sm:$0xf]  ;;  %vm44_vm0 = vcmp.gt.f32.partialorder %v43_v1, %v41_v0  ;;  %v53_v4 = vld [vmem:[#allocation2 + $0xc] sm:$0xf]  ;;  %v198_v5 = vmov 0   ;;  %s199_s10 = smov [#allocation7]  }
  0x29   :  { %v45_v3 = vsel %vm44_vm0, %v43_v1, %v41_v0  ;;  %v46_v6 = vsel %vm44_vm0, 1, %v198_v5  ;;  %s67_s11 = sshll.u32 %s199_s10, 4  ;;  %v58_v9 = vld [vmem:[#allocation5] sm:$0xf]  ;;  %s200_s12 = smov [#allocation8]   ;;  %s68_s11 = int_to_ptr.vmem [resolvable:$true] %s67_s11 }
  0x2a   :  { %vm49_vm1 = vcmp.gt.f32.partialorder %v48_v2, %v45_v3  ;;  %s77_s1 = sshll.u32 %s200_s12, 4  ;;  %s142_s13 = scalar_lea.vmem %s68_s11, 64  ;;  %s78_s1 = int_to_ptr.vmem [resolvable:$true] %s77_s1 }
  0x2b   :  { %v50_v7 = vsel %vm49_vm1, %v48_v2, %v45_v3  ;;  %v51_v8 = vsel %vm49_vm1, 16, %v46_v6  ;;  %p143_p2 = scmp.ne.s32.totalorder %s68_s11, %s142_s13  ;;  %p147_p3 = scmp.lt.s32.totalorder %s68_s11, %s68_s11 }
  0x2c   :  { %vm54_vm2 = vcmp.gt.f32.partialorder %v53_v4, %v50_v7  ;;  %p148_p4 = scmp.lt.s32.totalorder %s142_s13, %s142_s13 }
  0x2d   :  { %v55_v10 = vsel %vm54_vm2, %v53_v4, %v50_v7  ;;  %v56_v11 = vsel %vm54_vm2, 17, %v51_v8 }
  0x2e   :  { %57 = vst [vmem:[#allocation7] sm:$0xf] %v55_v10  ;;  %v59_v12 = vadd.s32 %v58_v9, %v56_v11  ;;  %p149_p5 = por %p148_p4, %p147_p3 }
  0x30   :  { %p150_p6 = pnand %p149_p5, %p143_p2 }
  0x32   :  { %153 = shalt.err (!%p150_p6)
}
  0x33   :  { %s154_s16 = scalar_lea.hbm %s271_s2, 64 }
  0x34   :  { %p155_p7 = scmp.ne.s32.totalorder %s271_s2, %s154_s16  ;;  %p158_p8 = scmp.lt.u32.totalorder %s154_s16, %s271_s2 }
  0x36   :  { %p160_p9 = pnand %p158_p8, %p155_p7 }
  0x38   :  { %163 = shalt.err (!%p160_p9)
}
  0x39   :  { %70 = dma.vmem_to_hbm [thread:$0]  %s68_s11, 64, %s271_s2, [#allocation4]   ;;  %60 = vst [vmem:[#allocation8] sm:$0xf] %v59_v12 }
  0x3a   :  { %s164_s23 = scalar_lea.vmem %s78_s1, 64  ;;  %p169_p11 = scmp.lt.s32.totalorder %s78_s1, %s78_s1 }
  0x3b   :  { %p165_p10 = scmp.ne.s32.totalorder %s78_s1, %s164_s23  ;;  %p170_p12 = scmp.lt.s32.totalorder %s164_s23, %s164_s23 }
  0x3d   :  { %p171_p13 = por %p170_p12, %p169_p11 }
  0x3f   :  { %p172_p0 = pnand %p171_p13, %p165_p10 }
  0x41   :  { %175 = shalt.err (!%p172_p0)
}
  0x42   :  { %s176_s26 = scalar_lea.hbm %s272_s3, 64 }
  0x43   :  { %p177_p1 = scmp.ne.s32.totalorder %s272_s3, %s176_s26  ;;  %p180_p2 = scmp.lt.u32.totalorder %s176_s26, %s272_s3 }
  0x45   :  { %p182_p3 = pnand %p180_p2, %p177_p1 }
  0x47   :  { %185 = shalt.err (!%p182_p3)
}
  0x48   :  { %80 = dma.vmem_to_hbm [thread:$0]  %s78_s1, 64, %s272_s3, [#allocation9]  }
  0x49   :  { %190 = dma.done.wait [#allocation4], 64  }
  0x4a   :  { %191 = vsyncadd [#allocation4], 4294967232 }
  0x4b   :  { %192 = dma.done.wait [#allocation9], 64  }
  0x4c   :  { %193 = vsyncadd [#allocation9], 4294967232 }
  0x4d   :  { %87 = vsyncpa [#allocation3], 1 }
  0x4e   :  { %88 = vsyncpa [#allocation6], 1 }
  0x4f   :  { %89 = vsyncpa [#allocation4], 1 }
  0x50   :  { %90 = vsyncpa [#allocation9], 1 }

</bundles_post_ra>
